<compile_context>
chip_gen: v5e
topology: v5e:2x2
jax: 0.10.0
libtpu: 0.0.40
codegen_flags: <defaults>
</compile_context>

<pallas_src>
import functools

import numpy as np
import jax
import jax.numpy as jnp
from jax import lax
from jax.experimental import pallas as pl
from jax.experimental.pallas import tpu as pltpu


# ---------------------------------------------------------------------------
# Host-side weight construction (resize matrices, crop folded in the wrapper).
# ---------------------------------------------------------------------------
def _build_resize_matrix(in_size: int, out_size: int, antialias: bool = True) -> np.ndarray:
    """(out_size, in_size) row-stochastic bilinear resize matrix.

    Matches torchvision/PIL antialiased bilinear for downscale (triangle
    filter with support scaled by the scale factor) and plain bilinear
    (align_corners=False) otherwise.
    """
    scale = in_size / out_size
    W = np.zeros((out_size, in_size), dtype=np.float32)
    if antialias and scale > 1.0:
        support = scale  # bilinear filter support (=1) * filterscale
        for i in range(out_size):
            center = (i + 0.5) * scale
            xmin = max(int(center - support + 0.5), 0)
            xmax = min(int(center + support + 0.5), in_size)
            ws = [max(0.0, 1.0 - abs((x - center + 0.5) / scale))
                  for x in range(xmin, xmax)]
            total = sum(ws)
            for k, x in enumerate(range(xmin, xmax)):
                W[i, x] = ws[k] / total
    else:
        for i in range(out_size):
            src = (i + 0.5) * scale - 0.5
            x0 = int(np.floor(src))
            frac = src - x0
            x0c = min(max(x0, 0), in_size - 1)
            x1c = min(max(x0 + 1, 0), in_size - 1)
            W[i, x0c] += (1.0 - frac)
            W[i, x1c] += frac
    return W


def _resized_dims(H: int, W: int, resize_size: int):
    """torchvision single-int resize: smaller edge -> resize_size, longer edge
    floor-scaled (int()), aspect ratio preserved."""
    if H <= W:
        return resize_size, int(resize_size * W / H)
    return int(resize_size * H / W), resize_size


def _vmem_limit_bytes():
    """Per-generation explicit scoped-VMEM limit (None -> keep compiler default)."""
    try:
        kind = jax.devices()[0].device_kind.lower()
    except Exception:
        return 48 * 1024 * 1024
    if "v2" in kind or "v3" in kind:
        return None                       # small VMEM: keep the default limit
    if "v6" in kind:
        return 96 * 1024 * 1024           # 128 MiB physical VMEM
    if "v5" in kind or "v4" in kind:
        return 64 * 1024 * 1024           # 128 MiB physical VMEM
    return 48 * 1024 * 1024               # v7x / unknown: 64 MiB per TC


def _pick_batch(num_planes, H, W, crop, *, in_itemsize, w_itemsize, vmem_limit):
    """Planes per grid step, budgeted against the SAME limit passed to Mosaic."""
    limit = vmem_limit if vmem_limit is not None else 16 * 1024 * 1024
    # Double-buffered weight blocks (constant index maps, budgeted anyway).
    weight_bytes = 2 * 2 * (crop * H + W * crop) * w_itemsize
    # Per-plane: double-buffered uint8 input block + double-buffered f32 output
    # block + working set (compute-dtype plane copy, f32 intermediate, result).
    per_plane = (2 * H * W * in_itemsize
                 + 2 * crop * crop * 4
                 + H * W * w_itemsize
                 + crop * max(H, W) * 4
                 + crop * crop * 4)
    budget = int(limit * 0.75) - weight_bytes   # headroom for compiler scratch
    cap = max(1, budget // max(per_plane, 1))
    cap = min(cap, 8)                           # bound the unrolled inner loop
    if num_planes >= 4:
        # Keep >= 4 grid steps so v7x's two TensorCores each retain >= 2 steps
        # of double-buffered prefetch overlap on the "parallel" axis.
        cap = min(cap, pl.cdiv(num_planes, 4))
    return int(max(1, min(cap, num_planes)))


# ---------------------------------------------------------------------------
# Kernel.
# ---------------------------------------------------------------------------
def _transform_kernel(wh_ref, wwt_ref, img_ref, out_ref, *,
                      batch, input_is_int, rows_first, compute_dtype):
    # wh_ref : (crop, H_in)  compute_dtype  -- center crop folded into rows
    # wwt_ref: (W_in, crop)  compute_dtype  -- crop folded + pre-transposed
    # img_ref: (B, H_in, W_in) original dtype (uint8 for images)
    # out_ref: (B, crop, crop) float32
    wh = wh_ref[...]
    wwt = wwt_ref[...]

    def body(b, carry):
        # uint8 -> bf16 cast happens on-chip (0..255 exact in bf16); HBM
        # traffic stays 1 byte/pixel.
        plane = img_ref[b].astype(compute_dtype)                          # (H, W)
        if rows_first:
            # Reduce H first (only when it saves a meaningful FLOP fraction).
            t = jnp.dot(wh, plane, preferred_element_type=jnp.float32)    # (crop, W)
            res = jnp.dot(t.astype(compute_dtype), wwt,
                          preferred_element_type=jnp.float32)             # (crop, crop)
        else:
            # Reduce W first: dominant matmul keeps M = H (MXU occupancy).
            t = jnp.dot(plane, wwt, preferred_element_type=jnp.float32)   # (H, crop)
            res = jnp.dot(wh, t.astype(compute_dtype),
                          preferred_element_type=jnp.float32)             # (crop, crop)
        if input_is_int:
            # torchvision: round half-to-even, clamp to uint8 range, then
            # convert_image_dtype(uint8 -> float32) == /255.  Fused here.
            res = jnp.clip(jnp.round(res), 0.0, 255.0) * jnp.float32(1.0 / 255.0)
        out_ref[b] = res
        return carry

    # fori_loop(unroll=True): bounded live ranges + full LLO visibility.
    lax.fori_loop(0, batch, body, None, unroll=True)


# ---------------------------------------------------------------------------
# Wrapper.
# ---------------------------------------------------------------------------
def imagenet_base_transform(img, *, crop_size: int, resize_size: int = 232,
                            antialias: bool = True):
    """img: (N, C, H, W), uint8 (or float). Returns (N, C, crop, crop) float32."""
    N, C, H, W = img.shape
    input_is_int = bool(jnp.issubdtype(img.dtype, jnp.integer))

    resize_h, resize_w = _resized_dims(H, W, resize_size)
    if resize_h < crop_size or resize_w < crop_size:
        # TODO(synk): torchvision center_crop zero-pads when crop_size exceeds
        # the resized edge; that branch is not modeled here.
        raise NotImplementedError("crop_size larger than a resized edge is not supported")

    # Center-crop offsets (torchvision: round((dim - crop) / 2)).
    top = int(round((resize_h - crop_size) / 2.0))
    left = int(round((resize_w - crop_size) / 2.0))

    # bf16 operands for integer images (exact pixels, ~2^-9 weight error,
    # within ~1-2 uint8 levels end-to-end); f32 for float inputs.
    compute_dtype = jnp.bfloat16 if input_is_int else jnp.float32

    wh_full = _build_resize_matrix(H, resize_h, antialias)    # (Hr, H)
    ww_full = _build_resize_matrix(W, resize_w, antialias)    # (Wr, W)
    # Fold the center crop into the resize weights (exact) and pre-transpose
    # the width weights so the kernel never transposes on-chip.
    wh = jnp.asarray(wh_full[top:top + crop_size, :], dtype=compute_dtype)        # (crop, H)
    wwt = jnp.asarray(ww_full[left:left + crop_size, :].T, dtype=compute_dtype)   # (W, crop)

    num_planes = N * C
    planes = img.reshape(num_planes, H, W)   # original dtype -> uint8 DMA

    vmem_limit = _vmem_limit_bytes()
    B = _pick_batch(num_planes, H, W, crop_size,
                    in_itemsize=planes.dtype.itemsize,
                    w_itemsize=jnp.dtype(compute_dtype).itemsize,
                    vmem_limit=vmem_limit)
    grid = (pl.cdiv(num_planes, B),)   # partial last block is masked by Pallas

    # Reduce the larger original edge first only when the FLOP saving
    # (crop^2 * |H-W|) exceeds ~1/8 of the dominant crop*H*W cost.
    rows_first = crop_size * (H - W) > (H * W) // 8

    kernel = functools.partial(
        _transform_kernel, batch=B, input_is_int=input_is_int,
        rows_first=rows_first, compute_dtype=compute_dtype)

    cp_kwargs = dict(dimension_semantics=("parallel",))
    if vmem_limit is not None:
        cp_kwargs["vmem_limit_bytes"] = int(vmem_limit)

    out = pl.pallas_call(
        kernel,
        out_shape=jax.ShapeDtypeStruct((num_planes, crop_size, crop_size),
                                       jnp.float32),
        grid=grid,
        in_specs=[
            pl.BlockSpec((crop_size, H), lambda i: (0, 0)),   # constant weight block
            pl.BlockSpec((W, crop_size), lambda i: (0, 0)),   # constant weight block
            pl.BlockSpec((B, H, W), lambda i: (i, 0, 0)),     # uint8 planes (full H/W)
        ],
        out_specs=pl.BlockSpec((B, crop_size, crop_size), lambda i: (i, 0, 0)),
        compiler_params=pltpu.CompilerParams(**cp_kwargs),
    )(wh, wwt, planes)

    return out.reshape(N, C, crop_size, crop_size)


# ---------------------------------------------------------------------------
# Pure-JAX reference (full-precision resize then crop) and self-test.
# ---------------------------------------------------------------------------
def _reference(img, wh_full, ww_full, crop, resize_h, resize_w):
    x = img.astype(jnp.float32)
    res = jnp.einsum('oh,nchw->ncow', wh_full, x, precision=lax.Precision.HIGHEST)
    res = jnp.einsum('pw,ncow->ncop', ww_full, res, precision=lax.Precision.HIGHEST)
    res = jnp.clip(jnp.round(res), 0.0, 255.0)
    top = int(round((resize_h - crop) / 2.0))
    left = int(round((resize_w - crop) / 2.0))
    return res[:, :, top:top + crop, left:left + crop] * (1.0 / 255.0)


if __name__ == "__main__":
    def run_case(name, N, C, H, W, resize_size, crop_size):
        key = jax.random.PRNGKey(0)
        img = jax.random.randint(key, (N, C, H, W), 0, 256,
                                 dtype=jnp.int32).astype(jnp.uint8)
        out = imagenet_base_transform(img, crop_size=crop_size,
                                      resize_size=resize_size, antialias=True)
        out = jax.block_until_ready(out)
        assert out.shape == (N, C, crop_size, crop_size), name
        assert out.dtype == jnp.float32, name

        rh, rw = _resized_dims(H, W, resize_size)
        wh_full = jnp.asarray(_build_resize_matrix(H, rh, True))
        ww_full = jnp.asarray(_build_resize_matrix(W, rw, True))
        ref = _reference(img, wh_full, ww_full, crop_size, rh, rw)

        diff = np.abs(np.asarray(out) - np.asarray(ref))
        # Kernel uses bf16 matmul operands with f32 accumulation: uint8 pixels
        # are exact in bf16 but the resize weights / intermediate carry <=2^-9
        # relative error, so isolated pixels may differ from the f32 reference
        # by 1-2 uint8 levels after rounding. Structural bugs (wrong crop,
        # transposed output, ...) produce errors far beyond this.
        assert diff.max() <= 3.0 / 255.0 + 1e-6, (name, float(diff.max()))
        assert diff.mean() <= 5e-3, (name, float(diff.mean()))

    # Small, module-consistent shapes (stand-ins for 232-resize / 224-crop).
    run_case("square_downscale",    2, 4, 16, 16, resize_size=8,  crop_size=6)
    run_case("nonsquare_downscale", 2, 4, 16, 24, resize_size=8,  crop_size=6)
    run_case("tall_downscale",      2, 3, 32, 16, resize_size=8,  crop_size=6)  # rows_first path
    run_case("partial_last_block",  7, 1, 16, 16, resize_size=8,  crop_size=6)  # cdiv grid + masked edge
    run_case("upscale_bilinear",    2, 4,  8,  8, resize_size=12, crop_size=8)

    print("KERNEL_OK")
</pallas_src>

<mosaic_0001>
module attributes {stable_mosaic.version = 11 : i64} {
  func.func @_transform_kernel(%arg0: i32, %arg1: memref<6x16xbf16, #tpu.memory_space<vmem>>, %arg2: memref<16x6xbf16, #tpu.memory_space<vmem>>, %arg3: memref<2x16x16xi8, #tpu.memory_space<vmem>>, %arg4: memref<2x6x6xf32, #tpu.memory_space<vmem>>) attributes {dimension_semantics = [#tpu.dimension_semantics<parallel>], iteration_bounds = array<i64: 4>, scalar_prefetch = 0 : i64, scratch_operands = 0 : i64, tpu.core_type = #tpu.core_type<tc>, window_params = [{pipeline_mode = #tpu.pipeline_mode<synchronous>, transform_indices = @transform_0, window_bounds = array<i64: 6, 16>}, {pipeline_mode = #tpu.pipeline_mode<synchronous>, transform_indices = @transform_1, window_bounds = array<i64: 16, 6>}, {transform_indices = @transform_2, window_bounds = array<i64: 2, 16, 16>}, {transform_indices = @transform_3, window_bounds = array<i64: 2, 6, 6>}]} {
    %c0 = arith.constant 0 : index
    %c0_0 = arith.constant 0 : index
    %0 = vector.load %arg1[%c0, %c0_0] : memref<6x16xbf16, #tpu.memory_space<vmem>>, vector<6x16xbf16>
    %c0_1 = arith.constant 0 : index
    %c0_2 = arith.constant 0 : index
    %1 = vector.load %arg2[%c0_1, %c0_2] : memref<16x6xbf16, #tpu.memory_space<vmem>>, vector<16x6xbf16>
    %c0_i32 = arith.constant 0 : i32
    %2 = arith.index_cast %c0_i32 : i32 to index
    %c0_3 = arith.constant 0 : index
    %c0_4 = arith.constant 0 : index
    %3 = vector.load %arg3[%2, %c0_3, %c0_4] : memref<2x16x16xi8, #tpu.memory_space<vmem>>, vector<1x16x16xi8>
    %4 = vector.shape_cast %3 : vector<1x16x16xi8> to vector<16x16xi8>
    %5 = arith.uitofp %4 : vector<16x16xi8> to vector<16x16xbf16>
    %cst = arith.constant dense<0.000000e+00> : vector<16x6xf32>
    %6 = tpu.matmul %5, %1, %cst {dimension_numbers = #tpu.dot_dimension_numbers<[1], [0], [0], [1], [0, 0, 1, 1], [], []>} : vector<16x16xbf16>, vector<16x6xbf16>, vector<16x6xf32> -> vector<16x6xf32>
    %7 = arith.truncf %6 : vector<16x6xf32> to vector<16x6xbf16>
    %cst_5 = arith.constant dense<0.000000e+00> : vector<6x6xf32>
    %8 = tpu.matmul %0, %7, %cst_5 {dimension_numbers = #tpu.dot_dimension_numbers<[1], [0], [0], [1], [0, 0, 1, 1], [], []>} : vector<6x16xbf16>, vector<16x6xbf16>, vector<6x6xf32> -> vector<6x6xf32>
    %9 = math.roundeven %8 : vector<6x6xf32>
    %cst_6 = arith.constant 0.000000e+00 : f32
    %cst_7 = arith.constant 2.550000e+02 : f32
    %10 = vector.broadcast %cst_6 : f32 to vector<6x6xf32>
    %11 = arith.maximumf %10, %9 : vector<6x6xf32>
    %12 = vector.broadcast %cst_7 : f32 to vector<6x6xf32>
    %13 = arith.minimumf %12, %11 : vector<6x6xf32>
    %cst_8 = arith.constant 0.00392156886 : f32
    %14 = vector.broadcast %cst_8 : f32 to vector<6x6xf32>
    %15 = arith.mulf %13, %14 : vector<6x6xf32>
    %16 = arith.index_cast %c0_i32 : i32 to index
    %c0_9 = arith.constant 0 : index
    %c0_10 = arith.constant 0 : index
    %17 = vector.load %arg4[%16, %c0_9, %c0_10] : memref<2x6x6xf32, #tpu.memory_space<vmem>>, vector<1x6x6xf32>
    %18 = vector.shape_cast %17 : vector<1x6x6xf32> to vector<6x6xf32>
    %19 = vector.shape_cast %15 : vector<6x6xf32> to vector<1x6x6xf32>
    tpu.vector_store %arg4[%16, %c0_9, %c0_10], %19 {strides = array<i32>} : memref<2x6x6xf32, #tpu.memory_space<vmem>>, vector<1x6x6xf32>,
    %c1_i32 = arith.constant 1 : i32
    %20 = arith.index_cast %c1_i32 : i32 to index
    %c0_11 = arith.constant 0 : index
    %c0_12 = arith.constant 0 : index
    %21 = vector.load %arg3[%20, %c0_11, %c0_12] : memref<2x16x16xi8, #tpu.memory_space<vmem>>, vector<1x16x16xi8>
    %22 = vector.shape_cast %21 : vector<1x16x16xi8> to vector<16x16xi8>
    %23 = arith.uitofp %22 : vector<16x16xi8> to vector<16x16xbf16>
    %cst_13 = arith.constant dense<0.000000e+00> : vector<16x6xf32>
    %24 = tpu.matmul %23, %1, %cst_13 {dimension_numbers = #tpu.dot_dimension_numbers<[1], [0], [0], [1], [0, 0, 1, 1], [], []>} : vector<16x16xbf16>, vector<16x6xbf16>, vector<16x6xf32> -> vector<16x6xf32>
    %25 = arith.truncf %24 : vector<16x6xf32> to vector<16x6xbf16>
    %cst_14 = arith.constant dense<0.000000e+00> : vector<6x6xf32>
    %26 = tpu.matmul %0, %25, %cst_14 {dimension_numbers = #tpu.dot_dimension_numbers<[1], [0], [0], [1], [0, 0, 1, 1], [], []>} : vector<6x16xbf16>, vector<16x6xbf16>, vector<6x6xf32> -> vector<6x6xf32>
    %27 = math.roundeven %26 : vector<6x6xf32>
    %cst_15 = arith.constant 0.000000e+00 : f32
    %cst_16 = arith.constant 2.550000e+02 : f32
    %28 = vector.broadcast %cst_15 : f32 to vector<6x6xf32>
    %29 = arith.maximumf %28, %27 : vector<6x6xf32>
    %30 = vector.broadcast %cst_16 : f32 to vector<6x6xf32>
    %31 = arith.minimumf %30, %29 : vector<6x6xf32>
    %cst_17 = arith.constant 0.00392156886 : f32
    %32 = vector.broadcast %cst_17 : f32 to vector<6x6xf32>
    %33 = arith.mulf %31, %32 : vector<6x6xf32>
    %34 = arith.index_cast %c1_i32 : i32 to index
    %c0_18 = arith.constant 0 : index
    %c0_19 = arith.constant 0 : index
    %35 = vector.load %arg4[%34, %c0_18, %c0_19] : memref<2x6x6xf32, #tpu.memory_space<vmem>>, vector<1x6x6xf32>
    %36 = vector.shape_cast %35 : vector<1x6x6xf32> to vector<6x6xf32>
    %37 = vector.shape_cast %33 : vector<6x6xf32> to vector<1x6x6xf32>
    tpu.vector_store %arg4[%34, %c0_18, %c0_19], %37 {strides = array<i32>} : memref<2x6x6xf32, #tpu.memory_space<vmem>>, vector<1x6x6xf32>,
    %c2_i32 = arith.constant 2 : i32
    return
  }
  func.func @transform_0(%arg0: i32) -> (i32, i32) {
    %c0_i32 = arith.constant 0 : i32
    %c0_i32_0 = arith.constant 0 : i32
    %c0_i32_1 = arith.constant 0 : i32
    return %c0_i32, %c0_i32_0 : i32, i32
  }
  func.func @transform_1(%arg0: i32) -> (i32, i32) {
    %c0_i32 = arith.constant 0 : i32
    %c0_i32_0 = arith.constant 0 : i32
    %c0_i32_1 = arith.constant 0 : i32
    return %c0_i32, %c0_i32_0 : i32, i32
  }
  func.func @transform_2(%arg0: i32) -> (i32, i32, i32) {
    %c0_i32 = arith.constant 0 : i32
    %c0_i32_0 = arith.constant 0 : i32
    %c0_i32_1 = arith.constant 0 : i32
    return %arg0, %c0_i32, %c0_i32_0 : i32, i32, i32
  }
  func.func @transform_3(%arg0: i32) -> (i32, i32, i32) {
    %c0_i32 = arith.constant 0 : i32
    %c0_i32_0 = arith.constant 0 : i32
    %c0_i32_1 = arith.constant 0 : i32
    return %arg0, %c0_i32, %c0_i32_0 : i32, i32, i32
  }
}

</mosaic_0001>

<bundles_post_ra>
// kernel: tpu_custom_call.1
= control target key start
LH: loop header
LB: loop body
LE: loop exit
PB: predicated region body
PF: predicated region fallthrough
CT: control target
= control target key end

     0   :  { %8 = vsyncpa [#allocation3], 0  ;;  %s649_s0 = inlined_call_operand.vmem [shape: bf16[6,16], index: 0, kind: input, shape index: {}]   ;;  %s650_s1 = inlined_call_operand.vmem [shape: bf16[16,6], index: 1, kind: input, shape index: {}]   ;;  %s651_s2 = inlined_call_operand.hbm [shape: u8[8,16,16], index: 2, kind: input, shape index: {}]   ;;  %s652_s3 = inlined_call_operand.vmem [shape: f32[8,6,6], index: 3, kind: output, shape index: {}]  }
   0x1   :  { %10 = vsyncpa [#allocation3 + $0x1], 0  ;;  %s552_s12 = smov 0   ;;  %s554_s13 = smov 0  }
   0x2   :  { %s556_s14 = smov 0   ;;  %s558_s15 = smov 0  }
   0x3 LB: > { %s370_s16 = sadd.s32 4294967295, %s528_s15   ;;  %s572_s17 = sadd.s32 1, %s528_s15   ;;  %s528_s15 = sphi %s558_s15, %s659_s15   ;;  %s524_s14 = sphi %s556_s14, %s658_s14   ;;  %s520_s13 = sphi %s554_s13, %s657_s13   ;;  %s516_s12 = sphi %s552_s12, %s656_s12  }
   0x4   : > { %s62_s18 = ssub.s32 %s528_s15, %s572_s17  ;;  %s65_s19 = sadd.s32 1, %s524_s14 }
   0x5   : > { %p63_p0 = scmp.eq.s32.totalorder %s62_s18, 0  ;;  %p72_p1 = scmp.ne.s32.totalorder %s524_s14, %s520_s13 }
   0x6   : > { %p73_p2 = scmp.eq.s32.totalorder %s528_s15, 0  ;;  %p78_p3 = scmp.ne.s32.totalorder %s520_s13, %s516_s12 }
   0x7   : > { %s582_s20 = scalar_select %p63_p0, %s524_s14, %s65_s19  }
   0x8   : > { %p584_p4 = por %p73_p2, %p72_p1  ;;  %p79_p5 = scmp.eq.s32.totalorder %s370_s16, 0 }
   0x9   : > { %p429_p6 = scmp.lt.s32.totalorder %s528_s15, 4  ;;  %s134_s23 = sand.u32 1, %s524_s14  }
   0xa   : > { %p591_p7 = por %p79_p5, %p78_p3  ;;  %s374_s24 = sshll.u32 %s134_s23, 3 }
   0xb   : > { %s396_s25 = sshll.u32 %s528_s15, 3  ;;  %s138_s29 = scalar_lea.vmem [#allocation2], %s374_s24 }
   0xc   : > { %s144_s28 = scalar_lea.hbm %s651_s2, %s396_s25  ;;  %s147_s30 = sshll.u32 %s138_s29, 4  ;;  %s148_s30 = int_to_ptr.vmem [resolvable:$true] %s147_s30 }
   0xd   : > { %s145_s4 = sshll.u32 %s144_s28, 4  ;;  %p602_p8 = pnand %p429_p6, %p584_p4  ;;  %s146_s4 = int_to_ptr.hbm [resolvable:$true] %s145_s4 }
   0xe   : > { %p378_p9 = scmp.ge.s32.totalorder %s528_s15, 1  ;;  %s135_s6 = scalar_lea.sflag [#allocation3], %s134_s23 }
   0xf   : > { %s464_s7 = sshra.s32 %s146_s4, 4  ;;  %p468_p11 = pneg %p602_p8  ;;  %s465_s7 = int_to_ptr.hbm [resolvable:$true] %s464_s7 }
  0x10   : > { %s466_s8 = scalar_lea.hbm %s465_s7, 8  ;;  %s471_s11 = scalar_lea.hbm %s651_s2, 32 }
  0x11   : > { %p467_p10 = scmp.ne.s32.totalorder %s465_s7, %s466_s8  ;;  %p472_p0 = scmp.lt.s32.totalorder %s465_s7, %s651_s2 }
  0x12   : > { %p473_p1 = scmp.lt.s32.totalorder %s471_s11, %s466_s8 }
  0x13   : > { %p469_p12 = pnand %p468_p11, %p467_p10 }
  0x14   : > { %p474_p2 = por %p473_p1, %p472_p0 }
  0x15   : > { %p470_p13 = pneg %p469_p12 }
  0x17   : > { %p475_p3 = pnand %p474_p2, %p470_p13 }
  0x19   : > { %478 = shalt.err (!%p475_p3)
}
  0x1a   : > { %s530_s19 = smov 32   ;;  %s531_s21 = smov 2  }
  0x1b   : > { %428 = dma.hbm_to_vmem [thread:$0]  (!%p602_p8), %s146_s4, 128, %s148_s30, %s135_s6, %s530_s19, %s530_s19, %s531_s21  }
  0x1c   : > { %p155_p4 = scmp.lt.s32.totalorder %s528_s15, 5 }
  0x1e   : > { %p156_p5 = pnand %p378_p9, %p155_p4 }
  0x1f   : > { %s161_s23 = sand.u32 (!%p156_p5), 1, %s520_s13  }
  0x20   : > { %159 = sbr.rel (%p156_p5) target bundleno = 341 (0x155), region = 32  ;;  %s379_s24 = sshll.u32 (!%p156_p5), %s161_s23, 3 }
  0x21   : > { %s162_s25 = scalar_lea.sflag (!%p156_p5), [#allocation3], %s161_s23  ;;  %s165_s26 = scalar_lea.vmem (!%p156_p5), [#allocation2], %s379_s24 }
  0x25   : > { %511 = dma.done.wait (%p591_p7), %s162_s25, 128  }
  0x26   : > { %513 = vsyncadd (%p591_p7), %s162_s25, 4294967168  ;;  %v397_v0 = vld [vmem:[%s650_s1] sm:$0xff]  ;;  %vm215_vm0 = vcmask 130048   ;;  %s380_s30 = sshll.u32 %s370_s16, 1  ;;  %vm254_vm2 = vcmask 46080  }
  0x27   : > { %v406_v1 = vld [vmem:[%s165_s26] sm:$0xff]   ;;  %276 = vmatpush.bf16.msra.mxu2 %v397_v0  ;;  %226 = vmatpush.bf16.msra.mxu0 %v397_v0  ;;  %p191_p6 = scmp.lt.s32.totalorder %s380_s30, 7 }
  0x28   : > { %v404_v2 = vunpack.c.2.s8 %v406_v1  ;;  %v405_v3 = vunpack.c.3.s8 %v406_v1  ;;  %v400_v4 = vunpack.c.0.s8 %v406_v1  ;;  %v401_v5 = vunpack.c.1.s8 %v406_v1  ;;  %v197_v20 = vld [vmem:[%s649_s0] sm:$0x7] }
  0x29   : > { %s661_s30 = smov (!%p191_p6, %s380_s30), 7 }
  0x2a   : > { %v261_v6 = vand.u32 255, %v404_v2  ;;  %v262_v7 = vand.u32 255, %v405_v3  ;;  %v204_v8 = vand.u32 255, %v400_v4  ;;  %v205_v9 = vand.u32 255, %v401_v5  ;;  %s381_s4 = sshll.u32 %s661_s30, 3 }
  0x2b   : > { %s194_s15 = scalar_lea.vmem %s652_s3, %s381_s4 }
  0x2c   : > { %v263_v10 = vcvt.s32.f32 %v261_v6  ;;  %v264_v11 = vcvt.s32.f32 %v262_v7  ;;  %v206_v12 = vcvt.s32.f32 %v204_v8  ;;  %v207_v13 = vcvt.s32.f32 %v205_v9 }
  0x2e   : > { %v265_v14 = vpack.c.bf16 %v264_v11, %v263_v10  ;;  %v208_v15 = vpack.c.bf16 %v207_v13, %v206_v12 }
  0x30   : > { %390 = vmatmul.msk.bf16.vlgmr.msra.gmra.mxu2 %vm215_vm0, %v265_v14  ;;  %386 = vmatmul.msk.bf16.vlgmr.msra.gmra.mxu0 %vm215_vm0, %v208_v15 }
  0xad   : > { %v228_v16 = vpop.f32.mrf.mxu0 }
  0xb3   : > { %v278_v17 = vpop.f32.mrf.mxu2 }
  0xb5   : > { %v230_v18 = vpop.f32.mrf.mxu0 }
  0xb6   : > { %v233_v19 = vpack.c.bf16 %v230_v18, %v228_v16 }
  0xb8   : > { %244 = vmatpush.bf16.msra.mxu1 %v233_v19 }
  0xbb   : > { %v280_v21 = vpop.f32.mrf.mxu2  ;;  %387 = vmatmul.msk.bf16.vlgmr.msra.gmra.mxu1 %vm215_vm0, %v197_v20 }
  0xbc   : > { %v283_v22 = vpack.c.bf16 %v280_v21, %v278_v17 }
  0xbe   : > { %291 = vmatpush.bf16.msra.mxu3 %v283_v22 }
  0xc1   : > { %391 = vmatmul.msk.bf16.vlgmr.msra.gmra.mxu3 %vm215_vm0, %v197_v20 }
 0x138   : > { %v246_v23 = vpop.f32.mrf.mxu1 }
 0x139   : > { %v409_v24 = vcvt.f32.s32 %v246_v23  ;;  %v407_v25 = vand.u32 2147483647, %v246_v23  ;;  %v412_v27 = vand.u32 2147483648, %v246_v23 }
 0x13b   : > { %v410_v26 = vcvt.s32.f32 %v409_v24  ;;  %vm408_vm1 = vcmp.lt.f32.partialorder %v407_v25, 8388608.0 }
 0x13d   : > { %v411_v28 = vand.u32 2147483647, %v410_v26 }
 0x13f   : > { %v413_v29 = vor.u32 %v412_v27, %v411_v28 }
 0x140   : > { %v248_v30 = vpop.f32.mrf.mxu1 }
 0x141   : > { %v414_v31 = vsel %vm408_vm1, %v413_v29, %v246_v23 }
 0x142   : > { %v251_v32 = vmax.f32 %v414_v31, 0.0 }
 0x144   : > { %v252_v33 = vmin.f32 %v251_v32, 255.0  ;;  %v293_v34 = vpop.f32.mrf.mxu3 }
 0x145   : > { %v417_v35 = vcvt.f32.s32 %v293_v34  ;;  %v415_v38 = vand.u32 2147483647, %v293_v34  ;;  %v420_v40 = vand.u32 2147483648, %v293_v34 }
 0x146   : > { %v253_v36 = vmul.f32 0.003921569, %v252_v33 }
 0x147   : > { %v418_v37 = vcvt.s32.f32 %v417_v35  ;;  %vm416_vm3 = vcmp.lt.f32.partialorder %v415_v38, 8388608.0 }
 0x148   : > { %255 = vst.msk [vmem:[%s194_s15] sm:$0x3f] %vm254_vm2, %v253_v36 }
 0x149   : > { %v419_v39 = vand.u32 2147483647, %v418_v37 }
 0x14b   : > { %v421_v41 = vor.u32 %v420_v40, %v419_v39 }
 0x14c   : > { %v295_v42 = vpop.f32.mrf.mxu3 }
 0x14d   : > { %v422_v43 = vsel %vm416_vm3, %v421_v41, %v293_v34 }
 0x14e   : > { %v298_v44 = vmax.f32 %v422_v43, 0.0 }
 0x150   : > { %v299_v45 = vmin.f32 %v298_v44, 255.0 }
 0x152   : > { %v300_v46 = vmul.f32 0.003921569, %v299_v45 }
 0x154   : > { %392 = vst.msk [vmem:[%s194_s15 + $0x8] sm:$0x3f] %vm254_vm2, %v300_v46 }
 0x155 PF: > { %p13_p7 = scmp.ge.s32.totalorder %s572_s17, 6   ;;  %s656_s12 = smov %s520_s13 }
 0x156   : > { %s657_s13 = smov %s524_s14  ;;  %s658_s14 = smov %s582_s20 }
 0x157   : > { %s659_s15 = smov %s572_s17  ;;  %15 = sbr.rel (!%p13_p7) target bundleno = 3 (0x3), region = 74 }
 0x15c   :  { %325 = vsyncpa [#allocation3], 1 }
 0x15d   :  { %327 = vsyncpa [#allocation3 + $0x1], 1 }

</bundles_post_ra>
